<compile_context>
chip_gen: v6e
topology: v6e:2x2x1
jax: 0.10.0
libtpu: 0.0.40
codegen_flags: <defaults>
</compile_context>

<pallas_src>
import functools

import jax
import jax.numpy as jnp
from jax.experimental import pallas as pl
from jax.experimental.pallas import tpu as pltpu

_LANES = 128
_SUBLANES = 8
_ACC_ROWS = 64  # 8 vregs of f32 accumulator.


def _pick_fold(tile_rows):
    for f in (_ACC_ROWS, 32, 16, 8):
        if tile_rows % f == 0:
            return f
    return 1


def _device_kind():
    try:
        return jax.devices()[0].device_kind.lower()
    except Exception:
        return ""


def _num_tensorcores(kind):
    # 2 TensorCores per chip on v7x (and v4/v5p megacore); 1 on v5e/v6e.
    return 2 if any(tag in kind for tag in ("7x", "v7", "v4", "v5p")) else 1


def _default_tile_rows(kind):
    # v5e: 16 MiB scoped-VMEM default -> 4096-row (2 MiB f32) tiles.
    # v6e/v7x: 32 MiB scoped default -> 8192-row (4 MiB f32) tiles; with 3
    # streams double-buffered that's 24 MiB, still < v7x's 64 MiB physical.
    if "v5e" in kind or "v5 lite" in kind or "v5lite" in kind:
        return 4096
    return 8192


def _reloss_kernel(*refs, has_psi, rows_total, tile_rows, blocks_per_core,
                   acc_fold, may_need_mask):
    if has_psi:
        pred_ref, targ_ref, psi_ref, out_ref, acc_ref = refs
    else:
        pred_ref, targ_ref, out_ref, acc_ref = refs

    c = pl.program_id(0)   # TensorCore split axis ("parallel")
    i = pl.program_id(1)   # streaming / reduction axis ("arbitrary")

    @pl.when(i == 0)
    def _():
        acc_ref[...] = jnp.zeros_like(acc_ref)

    # Inputs stream in native dtype; upcast in-kernel (v5e has no bf16 VPU).
    p = pred_ref[...].astype(jnp.float32)
    t = targ_ref[...].astype(jnp.float32)
    d = p - t
    vals = d * d  # TODO(synk): swap here if me.RELossFunc differs.
    if has_psi:
        vals = psi_ref[...].astype(jnp.float32) * vals

    def _accumulate(v):
        # Wide accumulator: acc_fold independent add chains per step instead
        # of one serial loop-carried chain into a single vreg.
        if acc_fold > 1:
            acc_ref[0:acc_fold, :] += v.reshape(-1, acc_fold, _LANES).sum(axis=0)
        else:
            acc_ref[0:1, :] += jnp.sum(v, axis=0, keepdims=True)

    if may_need_mask:
        # Only the ragged last block and (on a 2-core split with an odd block
        # count) the clamped duplicate block take the masked path; interior
        # blocks accumulate with zero extra VPU work.
        block_idx = c * blocks_per_core + i
        row0 = block_idx * tile_rows
        interior = row0 + tile_rows <= rows_total

        @pl.when(interior)
        def _():
            _accumulate(vals)

        @pl.when(jnp.logical_not(interior))
        def _():
            local_row = jax.lax.broadcasted_iota(jnp.int32, vals.shape, 0)
            _accumulate(jnp.where(row0 + local_row < rows_total, vals, 0.0))
    else:
        _accumulate(vals)

    @pl.when(i == pl.num_programs(1) - 1)
    def _():
        out_ref[...] = acc_ref[...]


def reloss(prediction, target, psi, *, tile_rows=None):
    """Computes mean(psi * (prediction - target)^2) with a Pallas TPU kernel."""
    assert prediction.shape == target.shape
    psi = jnp.asarray(psi)  # keep psi's own precision (no bf16 downcast)

    n = prediction.size
    flat_p = prediction.reshape(-1)
    flat_t = target.reshape(-1)

    # Scalar psi factors out of the sum -> never streamed from HBM.
    scalar_psi = psi.size == 1
    if scalar_psi:
        flat_w = None
    else:
        if psi.shape != prediction.shape:
            # TODO(synk): low-rank (e.g. per-channel) psi could be applied from
            # a small VMEM block instead of materializing a full broadcast.
            psi = jnp.broadcast_to(psi, prediction.shape)
        flat_w = psi.reshape(-1)
    has_psi = not scalar_psi

    kind = _device_kind()
    if tile_rows is None:
        tile_rows = _default_tile_rows(kind)

    # Only the 128-aligned prefix streams through the kernel; the <=127-element
    # tail is folded into the tiny JAX epilogue (no jnp.pad copy of 3 arrays).
    n_main = (n // _LANES) * _LANES

    def _tail_sum(lo):
        tp = flat_p[lo:].astype(jnp.float32)
        tt = flat_t[lo:].astype(jnp.float32)
        td = tp - tt
        tv = td * td
        if has_psi:
            tv = flat_w[lo:].astype(jnp.float32) * tv
        return jnp.sum(tv)

    if n_main == 0:
        total = _tail_sum(0)  # tiny input: pure-JAX path
    else:
        rows_total = n_main // _LANES
        if n_main == n:
            p2 = flat_p.reshape(rows_total, _LANES)  # free contiguous reshape
            t2 = flat_t.reshape(rows_total, _LANES)
            w2 = flat_w.reshape(rows_total, _LANES) if has_psi else None
        else:
            p2 = flat_p[:n_main].reshape(rows_total, _LANES)
            t2 = flat_t[:n_main].reshape(rows_total, _LANES)
            w2 = flat_w[:n_main].reshape(rows_total, _LANES) if has_psi else None

        if rows_total <= tile_rows:
            tile_rows_eff = rows_total  # single block == full dim (always legal)
        else:
            tile_rows_eff = max(_SUBLANES, (tile_rows // _SUBLANES) * _SUBLANES)
        total_blocks = pl.cdiv(rows_total, tile_rows_eff)

        # 2-way "parallel" split only where there really are 2 TensorCores.
        num_cores = _num_tensorcores(kind) if total_blocks >= 2 else 1
        blocks_per_core = pl.cdiv(total_blocks, num_cores)
        has_dup_block = num_cores * blocks_per_core > total_blocks
        may_need_mask = (rows_total % tile_rows_eff != 0) or has_dup_block
        acc_fold = _pick_fold(tile_rows_eff)

        if has_dup_block:
            def in_map(c, i):
                # Core 1's extra step re-reads a valid block; kernel masks it.
                return (jnp.minimum(c * blocks_per_core + i, total_blocks - 1), 0)
        else:
            def in_map(c, i):
                return (c * blocks_per_core + i, 0)

        tile_spec = pl.BlockSpec((tile_rows_eff, _LANES), in_map)
        streams = (p2, t2, w2) if has_psi else (p2, t2)

        # Explicit scoped-VMEM budget: 2 pipeline buffers per stream + headroom
        # (kept under v7x's 64 MiB physical VMEM per TensorCore).
        tile_bytes = sum(tile_rows_eff * _LANES * jnp.dtype(a.dtype).itemsize
                         for a in streams)
        vmem_limit = int(min(2 * tile_bytes + (6 << 20), 56 << 20))

        kernel = functools.partial(
            _reloss_kernel,
            has_psi=has_psi,
            rows_total=rows_total,
            tile_rows=tile_rows_eff,
            blocks_per_core=blocks_per_core,
            acc_fold=acc_fold,
            may_need_mask=may_need_mask,
        )

        partials = pl.pallas_call(
            kernel,
            out_shape=jax.ShapeDtypeStruct((num_cores * _ACC_ROWS, _LANES),
                                           jnp.float32),
            grid_spec=pltpu.PrefetchScalarGridSpec(
                num_scalar_prefetch=0,
                grid=(num_cores, blocks_per_core),
                in_specs=[tile_spec] * len(streams),
                out_specs=pl.BlockSpec((_ACC_ROWS, _LANES), lambda c, i: (c, 0)),
                scratch_shapes=[pltpu.VMEM((_ACC_ROWS, _LANES), jnp.float32)],
            ),
            compiler_params=pltpu.CompilerParams(
                dimension_semantics=("parallel", "arbitrary"),
                vmem_limit_bytes=vmem_limit,
            ),
        )(*streams)

        # Tiny epilogue: cross-lane/core reduce + optional tail + mean divisor.
        total = jnp.sum(partials)
        if n_main < n:
            total = total + _tail_sum(n_main)

    if scalar_psi:
        total = total * psi.reshape(()).astype(jnp.float32)
    return total / n


if __name__ == "__main__":
    key = jax.random.PRNGKey(0)
    k1, k2, k3 = jax.random.split(key, 3)

    # Small NCHW shapes consistent with a dense prediction task.
    B, C, H, W = 2, 4, 16, 16
    prediction = jax.random.normal(k1, (B, C, H, W), dtype=jnp.float32)
    target = jax.random.normal(k2, (B, C, H, W), dtype=jnp.float32)
    psi = jax.random.uniform(k3, (B, C, H, W), dtype=jnp.float32)

    # Full-shape (streamed) psi.
    loss = reloss(prediction, target, psi)
    jax.block_until_ready(loss)
    ref = jnp.mean(psi * (prediction - target) ** 2)
    assert jnp.allclose(loss, ref, rtol=1e-5, atol=1e-6), (loss, ref)

    # Scalar psi path (psi factored out; only 2 HBM streams).
    loss_s = reloss(prediction, target, 0.5)
    jax.block_until_ready(loss_s)
    ref_s = jnp.mean(0.5 * (prediction - target) ** 2)
    assert jnp.allclose(loss_s, ref_s, rtol=1e-5, atol=1e-6), (loss_s, ref_s)

    print("KERNEL_OK")
</pallas_src>

<mosaic_0001>
module attributes {stable_mosaic.version = 11 : i64} {
  func.func @_reloss_kernel(%arg0: i32, %arg1: i32, %arg2: memref<16x128xf32, #tpu.memory_space<vmem>>, %arg3: memref<16x128xf32, #tpu.memory_space<vmem>>, %arg4: memref<16x128xf32, #tpu.memory_space<vmem>>, %arg5: memref<64x128xf32, #tpu.memory_space<vmem>>, %arg6: memref<64x128xf32, #tpu.memory_space<vmem>>) attributes {dimension_semantics = [#tpu.dimension_semantics<parallel>, #tpu.dimension_semantics<arbitrary>], iteration_bounds = array<i64: 1, 1>, scalar_prefetch = 0 : i64, scratch_operands = 1 : i64, tpu.core_type = #tpu.core_type<tc>, window_params = [{transform_indices = @transform_0, window_bounds = array<i64: 16, 128>}, {transform_indices = @transform_1, window_bounds = array<i64: 16, 128>}, {transform_indices = @transform_2, window_bounds = array<i64: 16, 128>}, {transform_indices = @transform_3, window_bounds = array<i64: 64, 128>}]} {
    %c0_i32 = arith.constant 0 : i32
    %0 = arith.cmpi eq, %arg1, %c0_i32 : i32
    %1 = arith.extui %0 : i1 to i32
    %c0_i32_0 = arith.constant 0 : i32
    %2 = arith.cmpi ne, %1, %c0_i32_0 : i32
    scf.if %2 {
      %cst_12 = arith.constant 0.000000e+00 : f32
      %17 = vector.broadcast %cst_12 : f32 to vector<64x128xf32>
      %c0_13 = arith.constant 0 : index
      %c0_14 = arith.constant 0 : index
      %18 = vector.load %arg6[%c0_13, %c0_14] : memref<64x128xf32, #tpu.memory_space<vmem>>, vector<64x128xf32>
      tpu.vector_store %arg6[%c0_13, %c0_14], %17 {strides = array<i32>} : memref<64x128xf32, #tpu.memory_space<vmem>>, vector<64x128xf32>,
    } else {
    }
    %c0 = arith.constant 0 : index
    %c0_1 = arith.constant 0 : index
    %3 = vector.load %arg2[%c0, %c0_1] : memref<16x128xf32, #tpu.memory_space<vmem>>, vector<16x128xf32>
    %c0_2 = arith.constant 0 : index
    %c0_3 = arith.constant 0 : index
    %4 = vector.load %arg3[%c0_2, %c0_3] : memref<16x128xf32, #tpu.memory_space<vmem>>, vector<16x128xf32>
    %5 = arith.subf %3, %4 : vector<16x128xf32>
    %6 = arith.mulf %5, %5 : vector<16x128xf32>
    %c0_4 = arith.constant 0 : index
    %c0_5 = arith.constant 0 : index
    %7 = vector.load %arg4[%c0_4, %c0_5] : memref<16x128xf32, #tpu.memory_space<vmem>>, vector<16x128xf32>
    %8 = arith.mulf %7, %6 : vector<16x128xf32>
    %c0_6 = arith.constant 0 : index
    %c0_7 = arith.constant 0 : index
    %9 = vector.load %arg6[%c0_6, %c0_7] : memref<64x128xf32, #tpu.memory_space<vmem>>, vector<16x128xf32>
    %10 = vector.shape_cast %8 : vector<16x128xf32> to vector<1x16x128xf32>
    %cst = arith.constant dense<0.000000e+00> : vector<16x128xf32>
    %11 = vector.multi_reduction <add>, %10, %cst [0] : vector<1x16x128xf32> to vector<16x128xf32>
    %12 = arith.addf %9, %11 : vector<16x128xf32>
    %c0_8 = arith.constant 0 : index
    %c0_9 = arith.constant 0 : index
    %13 = vector.load %arg6[%c0_8, %c0_9] : memref<64x128xf32, #tpu.memory_space<vmem>>, vector<16x128xf32>
    tpu.vector_store %arg6[%c0_8, %c0_9], %12 {strides = array<i32>} : memref<64x128xf32, #tpu.memory_space<vmem>>, vector<16x128xf32>,
    %c0_i32_10 = arith.constant 0 : i32
    %14 = arith.cmpi eq, %arg1, %c0_i32_10 : i32
    %15 = arith.extui %14 : i1 to i32
    %c0_i32_11 = arith.constant 0 : i32
    %16 = arith.cmpi ne, %15, %c0_i32_11 : i32
    scf.if %16 {
      %c0_12 = arith.constant 0 : index
      %c0_13 = arith.constant 0 : index
      %17 = vector.load %arg6[%c0_12, %c0_13] : memref<64x128xf32, #tpu.memory_space<vmem>>, vector<64x128xf32>
      %c0_14 = arith.constant 0 : index
      %c0_15 = arith.constant 0 : index
      %18 = vector.load %arg5[%c0_14, %c0_15] : memref<64x128xf32, #tpu.memory_space<vmem>>, vector<64x128xf32>
      tpu.vector_store %arg5[%c0_14, %c0_15], %17 {strides = array<i32>} : memref<64x128xf32, #tpu.memory_space<vmem>>, vector<64x128xf32>,
    } else {
    }
    return
  }
  func.func @transform_0(%arg0: i32, %arg1: i32) -> (i32, i32) {
    %c1_i32 = arith.constant 1 : i32
    %0 = arith.muli %arg0, %c1_i32 : i32
    %1 = arith.addi %0, %arg1 : i32
    %c0_i32 = arith.constant 0 : i32
    %c0_i32_0 = arith.constant 0 : i32
    return %1, %c0_i32 : i32, i32
  }
  func.func @transform_1(%arg0: i32, %arg1: i32) -> (i32, i32) {
    %c1_i32 = arith.constant 1 : i32
    %0 = arith.muli %arg0, %c1_i32 : i32
    %1 = arith.addi %0, %arg1 : i32
    %c0_i32 = arith.constant 0 : i32
    %c0_i32_0 = arith.constant 0 : i32
    return %1, %c0_i32 : i32, i32
  }
  func.func @transform_2(%arg0: i32, %arg1: i32) -> (i32, i32) {
    %c1_i32 = arith.constant 1 : i32
    %0 = arith.muli %arg0, %c1_i32 : i32
    %1 = arith.addi %0, %arg1 : i32
    %c0_i32 = arith.constant 0 : i32
    %c0_i32_0 = arith.constant 0 : i32
    return %1, %c0_i32 : i32, i32
  }
  func.func @transform_3(%arg0: i32, %arg1: i32) -> (i32, i32) {
    %c0_i32 = arith.constant 0 : i32
    %c0_i32_0 = arith.constant 0 : i32
    return %arg0, %c0_i32 : i32, i32
  }
}

</mosaic_0001>

<bundles_post_ra>
// kernel: tpu_custom_call.1
= control target key start
LH: loop header
LB: loop body
LE: loop exit
PB: predicated region body
PF: predicated region fallthrough
CT: control target
= control target key end

     0   :  { %8 = vsyncpa [#allocation4], 0  ;;  %s287_s0 = inlined_call_operand.hbm [shape: f32[16,128], index: 0, kind: input, shape index: {}]   ;;  %s288_s1 = inlined_call_operand.hbm [shape: f32[16,128], index: 1, kind: input, shape index: {}]   ;;  %s289_s2 = inlined_call_operand.hbm [shape: f32[16,128], index: 2, kind: input, shape index: {}]   ;;  %s290_s3 = inlined_call_operand.hbm [shape: f32[64,128], index: 3, kind: output, shape index: {}]  }
   0x1   :  { %9 = vsyncpa [#allocation7], 0 }
   0x2   :  { %10 = vsyncpa [#allocation5], 0  ;;  %s236_s12 = smov [#allocation6]   ;;  %s237_s14 = smov [#allocation3]  }
   0x3   :  { %s36_s13 = sshll.u32 %s236_s12, 4  ;;  %s20_s15 = sshll.u32 %s237_s14, 4  ;;  %s37_s13 = int_to_ptr.vmem [resolvable:$true] %s36_s13  ;;  %s21_s15 = int_to_ptr.vmem [resolvable:$true] %s20_s15 }
   0x4   :  { %s158_s16 = scalar_lea.vmem %s37_s13, 256  ;;  %p163_p1 = scmp.lt.s32.totalorder %s37_s13, %s37_s13 }
   0x5   :  { %p159_p0 = scmp.ne.s32.totalorder %s37_s13, %s158_s16  ;;  %p164_p2 = scmp.lt.s32.totalorder %s158_s16, %s158_s16 }
   0x7   :  { %p165_p3 = por %p164_p2, %p163_p1 }
   0x9   :  { %p166_p4 = pnand %p165_p3, %p159_p0 }
   0xb   :  { %169 = shalt.err (!%p166_p4)
}
   0xc   :  { %s238_s17 = smov 128   ;;  %s239_s18 = smov 8  }
   0xd   :  { %42 = dma.hbm_to_vmem [thread:$0]  %s288_s1, 256, %s37_s13, [#allocation7], %s238_s17, %s238_s17, %s239_s18  }
   0xe   :  { %s178_s21 = scalar_lea.vmem %s21_s15, 256  ;;  %p183_p6 = scmp.lt.s32.totalorder %s21_s15, %s21_s15 }
   0xf   :  { %p179_p5 = scmp.ne.s32.totalorder %s21_s15, %s178_s21  ;;  %p184_p7 = scmp.lt.s32.totalorder %s178_s21, %s178_s21 }
  0x11   :  { %p185_p8 = por %p184_p7, %p183_p6 }
  0x13   :  { %p186_p9 = pnand %p185_p8, %p179_p5 }
  0x15   :  { %189 = shalt.err (!%p186_p9)
}
  0x16   :  { %26 = dma.hbm_to_vmem [thread:$0]  %s287_s0, 256, %s21_s15, [#allocation4], %s238_s17, %s238_s17, %s239_s18  }
  0x17   :  { %s240_s24 = smov [#allocation8]  }
  0x18   :  { %s52_s25 = sshll.u32 %s240_s24, 4  ;;  %s53_s25 = int_to_ptr.vmem [resolvable:$true] %s52_s25 }
  0x19   :  { %s198_s26 = scalar_lea.vmem %s53_s25, 256  ;;  %p203_p11 = scmp.lt.s32.totalorder %s53_s25, %s53_s25 }
  0x1a   :  { %p199_p10 = scmp.ne.s32.totalorder %s53_s25, %s198_s26  ;;  %p204_p12 = scmp.lt.s32.totalorder %s198_s26, %s198_s26 }
  0x1c   :  { %p205_p13 = por %p204_p12, %p203_p11 }
  0x1e   :  { %p206_p0 = pnand %p205_p13, %p199_p10 }
  0x20   :  { %209 = shalt.err (!%p206_p0)
}
  0x21   :  { %58 = dma.hbm_to_vmem [thread:$0]  %s289_s2, 256, %s53_s25, [#allocation7], %s238_s17, %s238_s17, %s239_s18  }
  0x22   :  { %230 = dma.done.wait [#allocation4], 256  }
  0x23   :  { %231 = vsyncadd [#allocation4], 4294967040 }
  0x24   :  { %232 = dma.done.wait [#allocation7], 512  }
  0x25   :  { %233 = vsyncadd [#allocation7], 4294966784  ;;  %v241_v0 = vmov 0.0   ;;  %v86_v1 = vld [vmem:[#allocation3] sm:$0xff]  ;;  %v88_v2 = vld [vmem:[#allocation6] sm:$0xff]  ;;  %s242_s0 = smov [#allocation9]  }
  0x26   :  { %119 = vst [vmem:[#allocation9 + $0x10] sm:$0xff] %v241_v0  ;;  %120 = vst [vmem:[#allocation9 + $0x18] sm:$0xff] %v241_v0  ;;  %v90_v3 = vsub.f32 %v86_v1, %v88_v2  ;;  %v87_v4 = vld [vmem:[#allocation3 + $0x8] sm:$0xff]  ;;  %v89_v5 = vld [vmem:[#allocation6 + $0x8] sm:$0xff]  ;;  %s130_s2 = sshll.u32 %s242_s0, 4  ;;  %s131_s2 = int_to_ptr.vmem [resolvable:$true] %s130_s2 }
  0x27   :  { %121 = vst [vmem:[#allocation9 + $0x20] sm:$0xff] %v241_v0  ;;  %122 = vst [vmem:[#allocation9 + $0x28] sm:$0xff] %v241_v0  ;;  %v94_v6 = vld [vmem:[#allocation8] sm:$0xff]  ;;  %v91_v7 = vsub.f32 %v87_v4, %v89_v5  ;;  %v95_v9 = vld [vmem:[#allocation8 + $0x8] sm:$0xff]  ;;  %s210_s28 = scalar_lea.vmem %s131_s2, 1024  ;;  %p215_p2 = scmp.lt.s32.totalorder %s131_s2, %s131_s2 }
  0x28   :  { %123 = vst [vmem:[#allocation9 + $0x30] sm:$0xff] %v241_v0  ;;  %124 = vst [vmem:[#allocation9 + $0x38] sm:$0xff] %v241_v0  ;;  %v92_v8 = vmul.f32 %v90_v3, %v90_v3  ;;  %p211_p1 = scmp.ne.s32.totalorder %s131_s2, %s210_s28  ;;  %p216_p3 = scmp.lt.s32.totalorder %s210_s28, %s210_s28 }
  0x29   :  { %v93_v10 = vmul.f32 %v91_v7, %v91_v7 }
  0x2a   :  { %v96_v11 = vmul.f32 %v94_v6, %v92_v8  ;;  %p217_p4 = por %p216_p3, %p215_p2 }
  0x2b   :  { %v97_v12 = vmul.f32 %v95_v9, %v93_v10 }
  0x2c   :  { %117 = vst [vmem:[#allocation9] sm:$0xff] %v96_v11  ;;  %p218_p5 = pnand %p217_p4, %p211_p1 }
  0x2d   :  { %118 = vst [vmem:[#allocation9 + $0x8] sm:$0xff] %v97_v12 }
  0x2e   :  { %221 = shalt.err (!%p218_p5)
}
  0x2f   :  { %136 = dma.vmem_to_hbm [thread:$0]  %s131_s2, 1024, %s290_s3, [#allocation5], %s238_s17, %s238_s17, %s239_s18  }
  0x30   :  { %234 = dma.done.wait [#allocation5], 1024  }
  0x31   :  { %235 = vsyncadd [#allocation5], 4294966272 }
  0x32   :  { %140 = vsyncpa [#allocation4], 1 }
  0x33   :  { %141 = vsyncpa [#allocation7], 1 }
  0x34   :  { %142 = vsyncpa [#allocation5], 1 }

</bundles_post_ra>
